<compile_context>
chip_gen: v7x
topology: tpu7x:2x2x1
jax: 0.10.0
libtpu: 0.0.40
codegen_flags: <defaults>
</compile_context>

<pallas_src>
import functools

import jax
import jax.numpy as jnp
from jax import lax
from jax.experimental import pallas as pl
from jax.experimental.pallas import tpu as pltpu

EPS = 1e-10
MIN_EXP = -8
MAX_EXP = 15
NUM_PROTOTYPE_BASED_EMBEDDINGS = MAX_EXP - MIN_EXP + 1  # 24


def _proto_embed_kernel(nums_ref, qs_ref, table_ref, out_ref, *, inv_sigma, exp_dim):
    # nums_ref:  (TN, 1) f32
    # qs_ref:    (1, mantissa_dim) f32, already divided by sigma
    # table_ref: (NUM_PROTOTYPE_BASED_EMBEDDINGS, exp_dim + 1) f32
    #            (last column holds 10^{-(k + MIN_EXP)})
    # out_ref:   (TN, exp_dim + mantissa_dim), out dtype
    nums = nums_ref[...]                                             # (TN, 1)
    exp_bases = jnp.floor(jnp.log10(nums + EPS))                     # (TN, 1)
    exp_idx = jnp.clip(exp_bases.astype(jnp.int32) - MIN_EXP,
                       0, NUM_PROTOTYPE_BASED_EMBEDDINGS - 1)        # (TN, 1)

    # Embedding lookup + 10^{-exp} scale fused in one tiny one-hot MXU matmul.
    # NOTE: the 10^{-exp} factor uses the *clamped* exponent; identical to the
    # reference for the module's supported decade range [1e-8, 1e16).
    iota = lax.broadcasted_iota(jnp.int32,
                                (1, NUM_PROTOTYPE_BASED_EMBEDDINGS), 1)
    onehot = (exp_idx == iota).astype(jnp.float32)                   # (TN, 24)
    gathered = jnp.dot(onehot, table_ref[...],
                       preferred_element_type=jnp.float32)           # (TN, ED+1)

    exp_embedding = gathered[:, :exp_dim]                            # (TN, ED)
    inv_pow10 = gathered[:, exp_dim:exp_dim + 1]                     # (TN, 1)
    mantissa = nums * inv_pow10                                      # (TN, 1)

    # z = (mantissa - q) / sigma, with q pre-divided by sigma in the wrapper.
    z = mantissa * jnp.float32(inv_sigma) - qs_ref[...]              # (TN, MD)
    mantissa_embedding = jnp.exp(-(z * z))                           # (TN, MD)

    out_ref[:, :exp_dim] = exp_embedding.astype(out_ref.dtype)
    out_ref[:, exp_dim:] = mantissa_embedding.astype(out_ref.dtype)


def _round_up(a, m):
    return (a + m - 1) // m * m


def prototype_based_embedding(numbers, q_values, emb_table, *, sigma=0.5,
                              tile_n=2048, out_dtype=jnp.bfloat16):
    """numbers: (B, S) f32; q_values: (mantissa_dim,) f32;
    emb_table: (NUM_PROTOTYPE_BASED_EMBEDDINGS, exp_dim) f32.
    Returns (B, S, exp_dim + mantissa_dim) in `out_dtype`."""
    B, S = numbers.shape
    N = B * S
    exp_dim = emb_table.shape[1]
    mantissa_dim = q_values.shape[0]
    D = exp_dim + mantissa_dim

    # Tile sizing: big tiles to amortize per-grid-step overhead, but keep at
    # least 2 grid steps when possible so the "parallel" grid axis can be
    # sharded across both TensorCores on v7x.
    tile_n = _round_up(max(8, tile_n), 8)
    if N > 8:
        tile_n = min(tile_n, _round_up(pl.cdiv(N, 2), 8))
    else:
        tile_n = 8
    N_pad = _round_up(N, tile_n)
    grid = N_pad // tile_n

    nums2 = numbers.reshape(N, 1).astype(jnp.float32)
    if N_pad != N:
        # Pad with 1.0 (benign value: log10 well-defined, no NaNs in padding).
        nums2 = jnp.pad(nums2, ((0, N_pad - N), (0, 0)), constant_values=1.0)

    # q pre-divided by sigma (one-time tiny op, not a per-element divide).
    q2 = (q_values.astype(jnp.float32) / jnp.float32(sigma)).reshape(1, mantissa_dim)

    # Extend table with a column of 10^{-(k + MIN_EXP)} so the one-hot matmul
    # also produces the power-of-ten reciprocal.
    ks = jnp.arange(NUM_PROTOTYPE_BASED_EMBEDDINGS, dtype=jnp.float32)
    inv_pow_col = jnp.float32(10.0) ** (-(ks + jnp.float32(MIN_EXP)))
    table_ext = jnp.concatenate(
        [emb_table.astype(jnp.float32), inv_pow_col[:, None]], axis=1)

    kernel = functools.partial(_proto_embed_kernel,
                               inv_sigma=1.0 / float(sigma), exp_dim=exp_dim)

    out = pl.pallas_call(
        kernel,
        out_shape=jax.ShapeDtypeStruct((N_pad, D), out_dtype),
        grid=(grid,),
        in_specs=[
            pl.BlockSpec((tile_n, 1), lambda i: (i, 0)),
            pl.BlockSpec((1, mantissa_dim), lambda i: (0, 0)),
            pl.BlockSpec((NUM_PROTOTYPE_BASED_EMBEDDINGS, exp_dim + 1),
                         lambda i: (0, 0)),
        ],
        out_specs=pl.BlockSpec((tile_n, D), lambda i: (i, 0)),
        compiler_params=pltpu.CompilerParams(
            dimension_semantics=("parallel",),
            vmem_limit_bytes=32 * 1024 * 1024),
    )(nums2, q2, table_ext)

    return out[:N].reshape(B, S, D)


def _reference(numbers, q_values, emb_table, sigma=0.5):
    exp_bases = jnp.floor(jnp.log10(numbers + EPS))
    exp_indexes = jnp.clip(exp_bases.astype(jnp.int32) - MIN_EXP,
                           0, NUM_PROTOTYPE_BASED_EMBEDDINGS - 1)
    mantissa = numbers / (10.0 ** exp_bases)
    mantissa_embedding = jnp.exp(
        -(((mantissa[:, :, None] - q_values[None, None, :]) / sigma) ** 2))
    exp_embedding = emb_table[exp_indexes]
    return jnp.concatenate([exp_embedding, mantissa_embedding], axis=-1)


if __name__ == "__main__":
    key = jax.random.PRNGKey(0)
    k_num, k_emb = jax.random.split(key)

    B, S = 2, 8
    output_dim = 32                      # divisible by 4
    exp_dim = output_dim // 4            # 8
    mantissa_dim = 3 * output_dim // 4   # 24
    sigma = 0.5

    # Deterministic parameters (nn.Embedding default init ~ N(0,1)).
    emb_table = jax.random.normal(
        k_emb, (NUM_PROTOTYPE_BASED_EMBEDDINGS, exp_dim), dtype=jnp.float32)
    q_values = (20.0 / (mantissa_dim - 1)) * jnp.arange(
        mantissa_dim, dtype=jnp.float32) - 10.0

    # Positive example "numbers" spanning several decades.
    numbers = jax.random.uniform(
        k_num, (B, S), dtype=jnp.float32, minval=1e-6, maxval=1e4)

    ref = _reference(numbers, q_values, emb_table, sigma=sigma)

    # f32 output path: tight correctness check.
    out_f32 = prototype_based_embedding(
        numbers, q_values, emb_table, sigma=sigma, out_dtype=jnp.float32)
    out_f32 = jax.block_until_ready(out_f32)
    assert out_f32.shape == (B, S, output_dim)
    assert jnp.allclose(out_f32, ref, atol=1e-4, rtol=1e-4), "f32 mismatch"

    # Default bf16 output path (halves HBM write traffic): loose check.
    out_bf16 = prototype_based_embedding(
        numbers, q_values, emb_table, sigma=sigma)
    out_bf16 = jax.block_until_ready(out_bf16)
    assert out_bf16.shape == (B, S, output_dim)
    assert out_bf16.dtype == jnp.bfloat16
    assert jnp.allclose(out_bf16.astype(jnp.float32), ref,
                        atol=5e-2, rtol=5e-2), "bf16 mismatch"

    print("KERNEL_OK")
</pallas_src>

<mosaic_0001>
module attributes {stable_mosaic.version = 11 : i64} {
  func.func @_proto_embed_kernel(%arg0: i32, %arg1: memref<8x1xf32, #tpu.memory_space<vmem>>, %arg2: memref<1x24xf32, #tpu.memory_space<vmem>>, %arg3: memref<24x9xf32, #tpu.memory_space<vmem>>, %arg4: memref<8x32xf32, #tpu.memory_space<vmem>>) attributes {dimension_semantics = [#tpu.dimension_semantics<parallel>], iteration_bounds = array<i64: 2>, scalar_prefetch = 0 : i64, scratch_operands = 0 : i64, tpu.core_type = #tpu.core_type<tc>, window_params = [{transform_indices = @transform_0, window_bounds = array<i64: 8, 1>}, {pipeline_mode = #tpu.pipeline_mode<synchronous>, transform_indices = @transform_1, window_bounds = array<i64: 1, 24>}, {pipeline_mode = #tpu.pipeline_mode<synchronous>, transform_indices = @transform_2, window_bounds = array<i64: 24, 9>}, {transform_indices = @transform_3, window_bounds = array<i64: 8, 32>}]} {
    %c0 = arith.constant 0 : index
    %c0_0 = arith.constant 0 : index
    %0 = vector.load %arg1[%c0, %c0_0] : memref<8x1xf32, #tpu.memory_space<vmem>>, vector<8x1xf32>
    %cst = arith.constant 1.000000e-10 : f32
    %1 = vector.broadcast %cst : f32 to vector<8x1xf32>
    %2 = arith.addf %0, %1 : vector<8x1xf32>
    %3 = math.log %2 : vector<8x1xf32>
    %cst_1 = arith.constant 0.434294492 : f32
    %4 = vector.broadcast %cst_1 : f32 to vector<8x1xf32>
    %5 = arith.mulf %3, %4 : vector<8x1xf32>
    %6 = math.floor %5 : vector<8x1xf32>
    %7 = arith.fptosi %6 : vector<8x1xf32> to vector<8x1xi32>
    %c-8_i32 = arith.constant -8 : i32
    %8 = vector.broadcast %c-8_i32 : i32 to vector<8x1xi32>
    %9 = arith.subi %7, %8 : vector<8x1xi32>
    %c0_i32 = arith.constant 0 : i32
    %c23_i32 = arith.constant 23 : i32
    %10 = vector.broadcast %c0_i32 : i32 to vector<8x1xi32>
    %11 = arith.maxsi %10, %9 : vector<8x1xi32>
    %12 = vector.broadcast %c23_i32 : i32 to vector<8x1xi32>
    %13 = arith.minsi %12, %11 : vector<8x1xi32>
    %14 = tpu.iota {dimensions = array<i32: 1>} : vector<1x24xi32>
    %15 = vector.broadcast %13 : vector<8x1xi32> to vector<8x24xi32>
    %16 = vector.broadcast %14 : vector<1x24xi32> to vector<8x24xi32>
    %17 = arith.cmpi eq, %15, %16 : vector<8x24xi32>
    %18 = arith.extui %17 : vector<8x24xi1> to vector<8x24xi32>
    %19 = arith.sitofp %18 : vector<8x24xi32> to vector<8x24xf32>
    %c0_2 = arith.constant 0 : index
    %c0_3 = arith.constant 0 : index
    %20 = vector.load %arg3[%c0_2, %c0_3] : memref<24x9xf32, #tpu.memory_space<vmem>>, vector<24x9xf32>
    %cst_4 = arith.constant dense<0.000000e+00> : vector<8x9xf32>
    %21 = tpu.matmul %19, %20, %cst_4 {dimension_numbers = #tpu.dot_dimension_numbers<[1], [0], [0], [1], [0, 0, 1, 1], [], []>} : vector<8x24xf32>, vector<24x9xf32>, vector<8x9xf32> -> vector<8x9xf32>
    %22 = vector.extract_strided_slice %21 {offsets = [0, 0], sizes = [8, 8], strides = [1, 1]} : vector<8x9xf32> to vector<8x8xf32>
    %23 = vector.extract_strided_slice %21 {offsets = [0, 8], sizes = [8, 1], strides = [1, 1]} : vector<8x9xf32> to vector<8x1xf32>
    %24 = arith.mulf %0, %23 : vector<8x1xf32>
    %cst_5 = arith.constant 2.000000e+00 : f32
    %25 = vector.broadcast %cst_5 : f32 to vector<8x1xf32>
    %26 = arith.mulf %24, %25 : vector<8x1xf32>
    %c0_6 = arith.constant 0 : index
    %c0_7 = arith.constant 0 : index
    %27 = vector.load %arg2[%c0_6, %c0_7] : memref<1x24xf32, #tpu.memory_space<vmem>>, vector<1x24xf32>
    %28 = vector.broadcast %26 : vector<8x1xf32> to vector<8x24xf32>
    %29 = vector.broadcast %27 : vector<1x24xf32> to vector<8x24xf32>
    %30 = arith.subf %28, %29 : vector<8x24xf32>
    %31 = arith.mulf %30, %30 : vector<8x24xf32>
    %cst_8 = arith.constant 0.000000e+00 : f32
    %32 = vector.broadcast %cst_8 : f32 to vector<8x24xf32>
    %33 = arith.subf %32, %31 : vector<8x24xf32>
    %34 = math.exp %33 : vector<8x24xf32>
    %c0_9 = arith.constant 0 : index
    %c0_10 = arith.constant 0 : index
    %35 = vector.load %arg4[%c0_9, %c0_10] : memref<8x32xf32, #tpu.memory_space<vmem>>, vector<8x8xf32>
    tpu.vector_store %arg4[%c0_9, %c0_10], %22 {strides = array<i32>} : memref<8x32xf32, #tpu.memory_space<vmem>>, vector<8x8xf32>,
    %c0_11 = arith.constant 0 : index
    %c8 = arith.constant 8 : index
    %36 = vector.load %arg4[%c0_11, %c8] : memref<8x32xf32, #tpu.memory_space<vmem>>, vector<8x24xf32>
    tpu.vector_store %arg4[%c0_11, %c8], %34 {strides = array<i32>} : memref<8x32xf32, #tpu.memory_space<vmem>>, vector<8x24xf32>,
    return
  }
  func.func @transform_0(%arg0: i32) -> (i32, i32) {
    %c0_i32 = arith.constant 0 : i32
    %c0_i32_0 = arith.constant 0 : i32
    return %arg0, %c0_i32 : i32, i32
  }
  func.func @transform_1(%arg0: i32) -> (i32, i32) {
    %c0_i32 = arith.constant 0 : i32
    %c0_i32_0 = arith.constant 0 : i32
    %c0_i32_1 = arith.constant 0 : i32
    return %c0_i32, %c0_i32_0 : i32, i32
  }
  func.func @transform_2(%arg0: i32) -> (i32, i32) {
    %c0_i32 = arith.constant 0 : i32
    %c0_i32_0 = arith.constant 0 : i32
    %c0_i32_1 = arith.constant 0 : i32
    return %c0_i32, %c0_i32_0 : i32, i32
  }
  func.func @transform_3(%arg0: i32) -> (i32, i32) {
    %c0_i32 = arith.constant 0 : i32
    %c0_i32_0 = arith.constant 0 : i32
    return %arg0, %c0_i32 : i32, i32
  }
}

</mosaic_0001>

<bundles_post_ra>
// kernel: tpu_custom_call.1
= control target key start
LH: loop header
LB: loop body
LE: loop exit
PB: predicated region body
PF: predicated region fallthrough
CT: control target
= control target key end

     0   :  { %8 = vsyncpa [#allocation3], 0  ;;  %s657_s0 = inlined_call_operand.vmem [shape: f32[16,1], index: 0, kind: input, shape index: {}]   ;;  %s658_s1 = inlined_call_operand.vmem [shape: f32[1,24], index: 1, kind: input, shape index: {}]   ;;  %s659_s2 = inlined_call_operand.vmem [shape: f32[24,9], index: 2, kind: input, shape index: {}]   ;;  %s660_s3 = inlined_call_operand.hbm [shape: f32[16,32], index: 3, kind: output, shape index: {}]  }
   0x1   :  { %10 = vsyncpa [#allocation3 + $0x1], 0  ;;  %s541_s12 = smov 0   ;;  %s543_s13 = smov 0  }
   0x2   :  { %s545_s14 = smov 0   ;;  %s547_s15 = smov 0  }
   0x3 LB: > { %s562_s16 = sadd.s32 4294967295, %s512_s15   ;;  %s367_s17 = sadd.s32 4294967294, %s512_s15   ;;  %s512_s15 = sphi %s547_s15, %s666_s15   ;;  %s508_s14 = sphi %s545_s14, %s665_s14   ;;  %s504_s13 = sphi %s543_s13, %s664_s13   ;;  %s500_s12 = sphi %s541_s12, %s663_s12  }
   0x4   : > { %s566_s18 = sadd.s32 1, %s512_s15   ;;  %s91_s19 = sadd.s32 1, %s508_s14 }
   0x5   : > { %s88_s20 = ssub.s32 %s512_s15, %s566_s18  ;;  %p101_p0 = scmp.ne.s32.totalorder %s508_s14, %s504_s13 }
   0x6   : > { %p89_p1 = scmp.eq.s32.totalorder %s88_s20, 0  ;;  %p102_p2 = scmp.eq.s32.totalorder %s562_s16, 1 }
   0x7   : > { %p107_p3 = scmp.ne.s32.totalorder %s504_s13, %s500_s12  ;;  %p108_p4 = scmp.eq.s32.totalorder %s367_s17, 1 }
   0x8   : > { %s577_s21 = scalar_select %p89_p1, %s508_s14, %s91_s19  }
   0x9   : > { %p579_p5 = por %p102_p2, %p101_p0  ;;  %p583_p6 = por %p108_p4, %p107_p3 }
   0xa   : > { %p370_p7 = scmp.ge.s32.totalorder %s512_s15, 1  ;;  %p139_p8 = scmp.lt.s32.totalorder %s512_s15, 3 }
   0xc   : > { %p140_p9 = pnand %p370_p7, %p139_p8 }
   0xd   : > { %p162_p10 = scmp.lt.s32.totalorder (!%p140_p9), %s562_s16, 1  ;;  %v186_v0 = vld [vmem:[%s659_s2] sm:$0xff] (!%p140_p9)  ;;  %v187_v1 = vld [vmem:[%s659_s2 + $0x8] sm:$0xff] (!%p140_p9)  ;;  %v514_v2 = vmov (!%p140_p9), 0   ;;  %v515_v3 = vmov (!%p140_p9), 0.0|0.0   ;;  %v516_v5 = vmov (!%p140_p9), 0.0   ;;  %v178_v18 = vlaneseq (!%p140_p9) }
   0xe   : > { %143 = sbr.rel (%p140_p9) target bundleno = 792 (0x318), region = 32  ;;  %444 = vset.pattern.permute.xlu0 (!%p140_p9), %v514_v2  ;;  %394 = vmatprep.subr.bf16.mxu0 (!%p140_p9), %v515_v3  ;;  %v395_v4 = vpack.c.bf16 (!%p140_p9), %v187_v1, %v186_v0  ;;  %v188_v17 = vld [vmem:[%s659_s2 + $0x10] sm:$0xff] (!%p140_p9)  ;;  %vm517_vm2 = vmmov (!%p140_p9), 0   ;;  %vm189_vm3 = vcmask (!%p140_p9), 195584   ;;  %s159_s8 = sand.u32 (!%p140_p9), 1, %s504_s13   ;;  %vm286_vm5 = vcmask (!%p140_p9), 64512  }
   0xf   : > { %445 = vset.pattern.permute.xlu1 (!%p140_p9), %v514_v2  ;;  %391 = vmatprep.mubr.msk.f32.mxu0 (!%p140_p9), %vm517_vm2, %v516_v5  ;;  %v179_v19 = vand.u32 (!%p140_p9), 127, %v178_v18  ;;  %s371_s9 = sshll.u32 (!%p140_p9), %s159_s8, 3  ;;  %s518_s11 = smov (!%p140_p9), 120   ;;  %v376_v27 = vld [vmem:[%s658_s1] ss:$0 sm:$0xff] (!%p140_p9)  ;;  %vm292_vm6 = vcmask (!%p140_p9), 261184  }
  0x10   : > { %396 = vmatpush3.bf16.msra.mxu0 (!%p140_p9), %v395_v4  ;;  %s161_s10 = scalar_lea.vmem (!%p140_p9), [#allocation2], %s371_s9  ;;  %s519_s20 = smov (!%p140_p9), 8  }
  0x11   : > { %389 = vmatprep.subr.mxu0 (!%p140_p9), %v516_v5  ;;  %s378_s24 = sshll.u32 (!%p140_p9), %s562_s16, 7  ;;  %s308_s25 = sshll.u32 (!%p140_p9), %s161_s10, 4  ;;  %s615_s25 = int_to_ptr.vmem [resolvable:$true] %s308_s25 }
  0x12   : > { %s450_s30 = scalar_lea.vmem (!%p140_p9), %s615_s25, 128 }
  0x13   : > { %p451_p11 = scmp.ne.s32.totalorder (!%p140_p9), %s615_s25, %s450_s30 }
  0x14   : > { %390 = vmatpush3.msra.mxu0 (!%p140_p9), %v188_v17 }
  0x15   : > { %s163_s28 = scalar_select %p162_p10, %s562_s16, 1 }
  0x16   : > { %p452_p12 = pnand %p451_p11, %p579_p5  ;;  %s520_s16 = smov [#allocation2]  }
  0x17   : > { %s372_s29 = sshll.u32 %s163_s28, 3  ;;  %s613_s28 = scalar_lea.hbm %s660_s3, %s378_s24 }
  0x18   : > { %s165_s5 = scalar_lea.vmem %s657_s0, %s372_s29  ;;  %s295_s29 = scalar_lea.sflag [#allocation3], %s159_s8 }
  0x19   : > { %v166_v6 = vld [vmem:[%s165_s5] sm:$0xff]  ;;  %p453_p13 = pneg %p452_p12  ;;  %s454_s4 = sshll.u32 %s520_s16, 4  ;;  %s455_s4 = int_to_ptr.vmem [resolvable:$false] %s454_s4 }
  0x1a   : > { %v167_v7 = vadd.f32 1e-10, %v166_v6  ;;  %s456_s5 = scalar_lea.vmem %s455_s4, 256  ;;  %p457_p0 = scmp.lt.s32.totalorder %s615_s25, %s455_s4 }
  0x1b   : > { %p458_p1 = scmp.lt.s32.totalorder %s456_s5, %s450_s30 }
  0x1c   : > { %446 = vlog2.f32 %v167_v7 }
  0x1d   : > { %p459_p2 = por %p458_p1, %p457_p0 }
  0x1f   : > { %p460_p3 = pnand %p459_p2, %p453_p13 }
  0x26   : > { %v447_v8 = vpop.eup %446 }
  0x27   : > { %v169_v9 = vmul.f32 0.6931472, %v447_v8 }
  0x29   : > { %v170_v10 = vmul.f32 0.4342945, %v169_v9 }
  0x2b   : > { %v171_v11 = vfloor.f32 %v170_v10 }
  0x2d   : > { %v397_v12 = vtrunc.f32 %v171_v11 }
  0x2f   : > { %v398_v13 = vcvt.f32.s32 %v397_v12 }
  0x31   : > { %v373_v14 = vadd.s32 8, %v398_v13 }
  0x33   : > { %vm174_vm0 = vcmp.gt.s32.totalorder %v373_v14, 0 }
  0x34   : > { %v175_v15 = vsel %vm174_vm0, %v373_v14, 0 }
  0x35   : > { %vm176_vm1 = vcmp.lt.s32.totalorder %v175_v15, 23 }
  0x36   : > { %v177_v16 = vsel %vm176_vm1, %v175_v15, 23 }
  0x37   : > { %181 = vperm.xlu0 %444, %v177_v16  }
  0xb6   : > { %v182_v20 = vpop.permute.xlu0 %181 }
  0xb7   : > { %vm183_vm4 = vcmp.eq.s32.totalorder %v182_v20, %v179_v19 }
  0xb8   : > { %v374_v21 = vsel %vm183_vm4, 1.0, %v516_v5 }
  0xb9   : > { %392 = vmatmul.mubr.msk.f32.vlgmr.msra.gmra.mrb[0].mxu0 %vm189_vm3, %v374_v21 }
 0x18c   : > { %v259_v22 = vpop.f32.mrb[0].mxu0 }
 0x18d   : > { %287 = vst.msk [vmem:[%s161_s10] sm:$0xff] %vm286_vm5, %v259_v22  ;;  %264 = vrot.lane.b32.xlu0 %v259_v22, %s518_s11  ;;  %v393_v23 = vpop.f32.mrb[1].mxu0 }
 0x1ff   : > { %v265_v24 = vpop.permute.xlu0 %264 }
 0x200   : > { %v267_v25 = vmul.f32 %v265_v24, %v166_v6 }
 0x202   : > { %v268_v26 = vmul.f32 2.0, %v267_v25 }
 0x204   : > { %272 = vperm.xlu1 %445, %v268_v26  }
 0x283   : > { %v273_v28 = vpop.permute.xlu1 %272 }
 0x284   : > { %v281_v29 = vsub.f32 %v273_v28, %v376_v27 }
 0x286   : > { %v282_v30 = vmul.f32 %v281_v29, %v281_v29 }
 0x288   : > { %v283_v31 = vsub.f32 0.0, %v282_v30 }
 0x28a   : > { %v284_v32 = vmul.f32 1.442695, %v283_v31 }
 0x28c   : > { %448 = vpow2.f32 %v284_v32 }
 0x296   : > { %v449_v33 = vpop.eup %448 }
 0x297   : > { %289 = vrot.lane.b32.xlu1 %v449_v33, %s519_s20 }
 0x309   : > { %v290_v34 = vpop.permute.xlu1 %289 }
 0x30a   : > { %293 = vst.msk [vmem:[%s161_s10] sm:$0xff] %vm292_vm6, %v290_v34 }
 0x30b   : > { %463 = shalt.err (!%p460_p3)
}
 0x30c   : > { %s464_s6 = scalar_lea.hbm %s613_s28, 128  ;;  %s468_s9 = scalar_lea.hbm %s660_s3, 256 }
 0x30d   : > { %p465_p4 = scmp.ne.s32.totalorder %s613_s28, %s464_s6  ;;  %p469_p9 = scmp.lt.u32.totalorder %s613_s28, %s660_s3 }
 0x30e   : > { %p470_p10 = scmp.lt.u32.totalorder %s468_s9, %s464_s6  ;;  %p472_p12 = scmp.lt.u32.totalorder %s464_s6, %s613_s28 }
 0x30f   : > { %p466_p7 = pnand %p465_p4, %p579_p5 }
 0x310   : > { %p471_p11 = por %p470_p10, %p469_p9 }
 0x311   : > { %p467_p8 = pneg %p466_p7 }
 0x312   : > { %p473_p13 = por %p472_p12, %p471_p11 }
 0x314   : > { %p474_p0 = pnand %p473_p13, %p467_p8 }
 0x316   : > { %477 = shalt.err (!%p474_p0)
}
 0x317   : > { %399 = dma.vmem_to_hbm [thread:$0]  (%p579_p5), %s615_s25, 128, %s613_s28, %s295_s29  }
 0x318 PF: > { %p405_p1 = scmp.ge.s32.totalorder %s512_s15, 2  ;;  %s320_s17 = sand.u32 1, %s500_s12  }
 0x319   : > { %s321_s19 = scalar_lea.sflag [#allocation3], %s320_s17 }
 0x31a   : > { %p402_p2 = pnand %p405_p1, %p583_p6 }
 0x31c   : > { %495 = dma.done.wait (!%p402_p2), %s321_s19, 128  }
 0x31d   : > { %497 = vsyncadd (!%p402_p2), %s321_s19, 4294967168  ;;  %p13_p3 = scmp.ge.s32.totalorder %s566_s18, 4   ;;  %s663_s12 = smov %s504_s13 }
 0x31e   : > { %s664_s13 = smov %s508_s14  ;;  %s665_s14 = smov %s577_s21 }
 0x31f   : > { %s666_s15 = smov %s566_s18  ;;  %15 = sbr.rel (!%p13_p3) target bundleno = 3 (0x3), region = 67 }
 0x326   :  { %326 = vsyncpa [#allocation3], 1 }
 0x327   :  { %328 = vsyncpa [#allocation3 + $0x1], 1 }

</bundles_post_ra>
